<compile_context>
chip_gen: v7x
topology: tpu7x:2x2x1
jax: 0.10.0
libtpu: 0.0.40
codegen_flags: <defaults>
</compile_context>

<pallas_src>
import functools

import jax
import jax.numpy as jnp
from jax.experimental import pallas as pl
from jax.experimental.pallas import tpu as pltpu

INPUT_SIZE = 784
HIDDEN = [512, 256]
NUM_CLASSES = 10
OUT_PAD = 128                 # lane-dense padded classifier width (keep at 128)
BN_EPS = 1e-5
MEGACORE_MIN_TILE = 256       # below this per-tile batch, don't force 2 tiles


def _round_up(x, m):
    return (x + m - 1) // m * m


def _mlp_kernel(x_ref, w1_ref, t1_ref, w2_ref, t2_ref, w3_ref, b3_ref, o_ref):
    # layer1: Linear(784,512) with folded BN scale, + BN shift, ReLU  (Dropout=identity, eval)
    x = x_ref[...].astype(jnp.bfloat16)                               # (TB, 784)
    h1 = jnp.dot(x, w1_ref[...], preferred_element_type=jnp.float32)
    h1 = jnp.maximum(h1 + t1_ref[...], 0.0)                           # f32 elementwise

    # layer2: Linear(512,256) with folded BN scale, + BN shift, ReLU  (Dropout=identity, eval)
    h2 = jnp.dot(h1.astype(jnp.bfloat16), w2_ref[...],
                 preferred_element_type=jnp.float32)
    h2 = jnp.maximum(h2 + t2_ref[...], 0.0)

    # classifier: Linear(256,10), zero-padded to 128 lanes for an unmasked,
    # lane-dense bf16 store.
    o = jnp.dot(h2.astype(jnp.bfloat16), w3_ref[...],
                preferred_element_type=jnp.float32) + b3_ref[...]
    o_ref[...] = o.astype(o_ref.dtype)


def prepare_params(params):
    """One-time prep: fold BN(eval) into weights, pad classifier, cast to bf16."""
    (w1, b1, g1, be1, m1, v1,
     w2, b2, g2, be2, m2, v2,
     w3, b3) = params

    # BatchNorm1d(eval): bn(h) = (h - mean) * gamma / sqrt(var+eps) + beta
    #   with h = x @ W^T + b  =>  x @ (W^T * s) + ((b - mean) * s + beta)
    s1 = g1 / jnp.sqrt(v1 + BN_EPS)
    t1 = (b1 - m1) * s1 + be1
    s2 = g2 / jnp.sqrt(v2 + BN_EPS)
    t2 = (b2 - m2) * s2 + be2

    w1p = w1.T * s1[None, :]                                         # (784, 512)
    w2p = w2.T * s2[None, :]                                         # (512, 256)
    # Pad classifier to a lane-dense 128-wide output.
    w3p = jnp.pad(w3.T, ((0, 0), (0, OUT_PAD - NUM_CLASSES)))        # (256, 128)
    b3p = jnp.pad(b3, (0, OUT_PAD - NUM_CLASSES))                    # (128,)

    return (w1p.astype(jnp.bfloat16), t1.reshape(1, -1).astype(jnp.float32),
            w2p.astype(jnp.bfloat16), t2.reshape(1, -1).astype(jnp.float32),
            w3p.astype(jnp.bfloat16), b3p.reshape(1, -1).astype(jnp.float32))


@functools.partial(jax.jit, static_argnames=("batch_tile",))
def adaptive_regularized_forward(x, prepared, batch_tile=1024):
    """x: (B, 1, 28, 28) or (B, 784). Returns logits (B, 10) float32."""
    w1p, t1, w2p, t2, w3p, b3p = prepared

    B = x.shape[0]
    x2d = x.reshape(B, -1).astype(jnp.float32)            # x.view(x.size(0), -1)
    assert x2d.shape[1] == INPUT_SIZE

    # Balanced batch tiling, no explicit padding (ragged last block is fine:
    # OOB rows are computed but never written back).  Force >= 2 tiles for
    # large batches so both v7x TensorCores get work.
    n_tiles = pl.cdiv(B, batch_tile)
    if n_tiles < 2 and B >= 2 * MEGACORE_MIN_TILE:
        n_tiles = 2
    TB = _round_up(pl.cdiv(B, n_tiles), 8)
    if TB >= B:
        TB = B                                            # single full-batch block
    grid = (pl.cdiv(B, TB),)

    resident = lambda shape: pl.BlockSpec(shape, lambda i: (0, 0))

    cost = pl.CostEstimate(
        flops=2 * B * (INPUT_SIZE * HIDDEN[0] + HIDDEN[0] * HIDDEN[1]
                       + HIDDEN[1] * OUT_PAD),
        transcendentals=0,
        bytes_accessed=(B * INPUT_SIZE * 4                 # f32 activations in
                        + B * OUT_PAD * 2                  # bf16 logits slab out
                        + (INPUT_SIZE * HIDDEN[0] + HIDDEN[0] * HIDDEN[1]
                           + HIDDEN[1] * OUT_PAD) * 2      # bf16 weights
                        + (HIDDEN[0] + HIDDEN[1] + OUT_PAD) * 4),  # f32 shifts
    )

    out = pl.pallas_call(
        _mlp_kernel,
        out_shape=jax.ShapeDtypeStruct((B, OUT_PAD), jnp.bfloat16),
        grid=grid,
        in_specs=[
            pl.BlockSpec((TB, INPUT_SIZE), lambda i: (i, 0)),             # x tile
            resident((INPUT_SIZE, HIDDEN[0])), resident((1, HIDDEN[0])),  # w1, t1
            resident((HIDDEN[0], HIDDEN[1])), resident((1, HIDDEN[1])),   # w2, t2
            resident((HIDDEN[1], OUT_PAD)), resident((1, OUT_PAD)),       # w3, b3
        ],
        out_specs=pl.BlockSpec((TB, OUT_PAD), lambda i: (i, 0)),
        compiler_params=pltpu.CompilerParams(
            dimension_semantics=("parallel",),
            vmem_limit_bytes=32 << 20,
        ),
        cost_estimate=cost,
    )(x2d, w1p, t1, w2p, t2, w3p, b3p)

    return out[:, :NUM_CLASSES].astype(jnp.float32)


def init_params(key):
    """Deterministic parameter init matching the PyTorch module's shapes."""
    ks = jax.random.split(key, 8)

    def lin(kw, kb, fan_in, fan_out):
        bound = 1.0 / jnp.sqrt(fan_in)
        w = jax.random.uniform(kw, (fan_out, fan_in), jnp.float32, -bound, bound)
        b = jax.random.uniform(kb, (fan_out,), jnp.float32, -bound, bound)
        return w, b

    w1, b1 = lin(ks[0], ks[1], INPUT_SIZE, HIDDEN[0])
    w2, b2 = lin(ks[2], ks[3], HIDDEN[0], HIDDEN[1])
    w3, b3 = lin(ks[4], ks[5], HIDDEN[1], NUM_CLASSES)

    # BatchNorm1d params + running stats (deterministic, non-trivial values).
    g1 = 1.0 + 0.1 * jax.random.normal(ks[6], (HIDDEN[0],), jnp.float32)
    be1 = 0.1 * jax.random.normal(ks[7], (HIDDEN[0],), jnp.float32)
    m1 = 0.05 * jnp.sin(jnp.arange(HIDDEN[0], dtype=jnp.float32))
    v1 = 1.0 + 0.1 * jnp.cos(jnp.arange(HIDDEN[0], dtype=jnp.float32)) ** 2

    g2 = 1.0 + 0.1 * jax.random.normal(jax.random.fold_in(key, 100), (HIDDEN[1],), jnp.float32)
    be2 = 0.1 * jax.random.normal(jax.random.fold_in(key, 101), (HIDDEN[1],), jnp.float32)
    m2 = 0.05 * jnp.sin(jnp.arange(HIDDEN[1], dtype=jnp.float32))
    v2 = 1.0 + 0.1 * jnp.cos(jnp.arange(HIDDEN[1], dtype=jnp.float32)) ** 2

    return (w1, b1, g1, be1, m1, v1,
            w2, b2, g2, be2, m2, v2,
            w3, b3)


def reference_forward(x, params):
    """Pure-JAX f32 reference of the PyTorch eval-mode forward semantics."""
    (w1, b1, g1, be1, m1, v1,
     w2, b2, g2, be2, m2, v2,
     w3, b3) = params
    h = x.reshape(x.shape[0], -1).astype(jnp.float32)
    h = h @ w1.T + b1
    h = (h - m1) / jnp.sqrt(v1 + BN_EPS) * g1 + be1
    h = jnp.maximum(h, 0.0)
    h = h @ w2.T + b2
    h = (h - m2) / jnp.sqrt(v2 + BN_EPS) * g2 + be2
    h = jnp.maximum(h, 0.0)
    return h @ w3.T + b3


def prepared_reference(x, prepared):
    """Pure-JAX reference that mirrors the kernel's exact numeric path
    (bf16 matmul operands, f32 accumulation / elementwise, bf16 output)."""
    w1p, t1, w2p, t2, w3p, b3p = prepared
    B = x.shape[0]
    h = x.reshape(B, -1).astype(jnp.float32).astype(jnp.bfloat16)
    h1 = jnp.dot(h, w1p, preferred_element_type=jnp.float32)
    h1 = jnp.maximum(h1 + t1, 0.0)
    h2 = jnp.dot(h1.astype(jnp.bfloat16), w2p, preferred_element_type=jnp.float32)
    h2 = jnp.maximum(h2 + t2, 0.0)
    o = jnp.dot(h2.astype(jnp.bfloat16), w3p, preferred_element_type=jnp.float32) + b3p
    o = o.astype(jnp.bfloat16)
    return o[:, :NUM_CLASSES].astype(jnp.float32)


if __name__ == "__main__":
    key = jax.random.PRNGKey(0)
    kx, kp = jax.random.split(key)

    B = 8
    x = jax.random.normal(kx, (B, 1, 28, 28), jnp.float32)   # flattens to 784
    params = init_params(kp)
    prepared = prepare_params(params)                         # one-time param prep

    out = adaptive_regularized_forward(x, prepared)
    out = jax.block_until_ready(out)
    assert out.shape == (B, NUM_CLASSES)

    # 1) Strict check against a reference that follows the kernel's exact
    #    numeric path (bf16 operands, f32 accumulate, bf16 output cast).
    ref_num = prepared_reference(x, prepared)
    err_num = float(jnp.max(jnp.abs(out - ref_num)))
    assert err_num < 5e-2, f"kernel vs numeric-path reference: max abs err {err_num}"

    # 2) Sanity check against the pure-f32 PyTorch eval-mode semantics
    #    (loose tolerance for bf16 operand/output quantization).
    ref_f32 = reference_forward(x, params)
    err_sem = float(jnp.max(jnp.abs(out - ref_f32)))
    assert err_sem < 1.5e-1, f"kernel vs f32 semantic reference: max abs err {err_sem}"

    print("KERNEL_OK")
</pallas_src>

<mosaic_0001>
module attributes {stable_mosaic.version = 11 : i64} {
  func.func @_mlp_kernel(%arg0: i32, %arg1: memref<8x784xf32, #tpu.memory_space<vmem>>, %arg2: memref<784x512xbf16, #tpu.memory_space<vmem>>, %arg3: memref<1x512xf32, #tpu.memory_space<vmem>>, %arg4: memref<512x256xbf16, #tpu.memory_space<vmem>>, %arg5: memref<1x256xf32, #tpu.memory_space<vmem>>, %arg6: memref<256x128xbf16, #tpu.memory_space<vmem>>, %arg7: memref<1x128xf32, #tpu.memory_space<vmem>>, %arg8: memref<8x128xbf16, #tpu.memory_space<vmem>>) attributes {dimension_semantics = [#tpu.dimension_semantics<parallel>], iteration_bounds = array<i64: 1>, scalar_prefetch = 0 : i64, scratch_operands = 0 : i64, tpu.core_type = #tpu.core_type<tc>, window_params = [{transform_indices = @transform_0, window_bounds = array<i64: 8, 784>}, {pipeline_mode = #tpu.pipeline_mode<synchronous>, transform_indices = @transform_1, window_bounds = array<i64: 784, 512>}, {pipeline_mode = #tpu.pipeline_mode<synchronous>, transform_indices = @transform_2, window_bounds = array<i64: 1, 512>}, {pipeline_mode = #tpu.pipeline_mode<synchronous>, transform_indices = @transform_3, window_bounds = array<i64: 512, 256>}, {pipeline_mode = #tpu.pipeline_mode<synchronous>, transform_indices = @transform_4, window_bounds = array<i64: 1, 256>}, {pipeline_mode = #tpu.pipeline_mode<synchronous>, transform_indices = @transform_5, window_bounds = array<i64: 256, 128>}, {pipeline_mode = #tpu.pipeline_mode<synchronous>, transform_indices = @transform_6, window_bounds = array<i64: 1, 128>}, {transform_indices = @transform_7, window_bounds = array<i64: 8, 128>}]} {
    %c0 = arith.constant 0 : index
    %c0_0 = arith.constant 0 : index
    %0 = vector.load %arg1[%c0, %c0_0] : memref<8x784xf32, #tpu.memory_space<vmem>>, vector<8x784xf32>
    %1 = arith.truncf %0 : vector<8x784xf32> to vector<8x784xbf16>
    %c0_1 = arith.constant 0 : index
    %c0_2 = arith.constant 0 : index
    %2 = vector.load %arg2[%c0_1, %c0_2] : memref<784x512xbf16, #tpu.memory_space<vmem>>, vector<784x512xbf16>
    %cst = arith.constant dense<0.000000e+00> : vector<8x512xf32>
    %3 = tpu.matmul %1, %2, %cst {dimension_numbers = #tpu.dot_dimension_numbers<[1], [0], [0], [1], [0, 0, 1, 1], [], []>} : vector<8x784xbf16>, vector<784x512xbf16>, vector<8x512xf32> -> vector<8x512xf32>
    %c0_3 = arith.constant 0 : index
    %c0_4 = arith.constant 0 : index
    %4 = vector.load %arg3[%c0_3, %c0_4] : memref<1x512xf32, #tpu.memory_space<vmem>>, vector<1x512xf32>
    %5 = vector.broadcast %4 : vector<1x512xf32> to vector<8x512xf32>
    %6 = arith.addf %3, %5 : vector<8x512xf32>
    %cst_5 = arith.constant 0.000000e+00 : f32
    %7 = vector.broadcast %cst_5 : f32 to vector<8x512xf32>
    %8 = arith.maximumf %6, %7 : vector<8x512xf32>
    %9 = arith.truncf %8 : vector<8x512xf32> to vector<8x512xbf16>
    %c0_6 = arith.constant 0 : index
    %c0_7 = arith.constant 0 : index
    %10 = vector.load %arg4[%c0_6, %c0_7] : memref<512x256xbf16, #tpu.memory_space<vmem>>, vector<512x256xbf16>
    %cst_8 = arith.constant dense<0.000000e+00> : vector<8x256xf32>
    %11 = tpu.matmul %9, %10, %cst_8 {dimension_numbers = #tpu.dot_dimension_numbers<[1], [0], [0], [1], [0, 0, 1, 1], [], []>} : vector<8x512xbf16>, vector<512x256xbf16>, vector<8x256xf32> -> vector<8x256xf32>
    %c0_9 = arith.constant 0 : index
    %c0_10 = arith.constant 0 : index
    %12 = vector.load %arg5[%c0_9, %c0_10] : memref<1x256xf32, #tpu.memory_space<vmem>>, vector<1x256xf32>
    %13 = vector.broadcast %12 : vector<1x256xf32> to vector<8x256xf32>
    %14 = arith.addf %11, %13 : vector<8x256xf32>
    %cst_11 = arith.constant 0.000000e+00 : f32
    %15 = vector.broadcast %cst_11 : f32 to vector<8x256xf32>
    %16 = arith.maximumf %14, %15 : vector<8x256xf32>
    %17 = arith.truncf %16 : vector<8x256xf32> to vector<8x256xbf16>
    %c0_12 = arith.constant 0 : index
    %c0_13 = arith.constant 0 : index
    %18 = vector.load %arg6[%c0_12, %c0_13] : memref<256x128xbf16, #tpu.memory_space<vmem>>, vector<256x128xbf16>
    %cst_14 = arith.constant dense<0.000000e+00> : vector<8x128xf32>
    %19 = tpu.matmul %17, %18, %cst_14 {dimension_numbers = #tpu.dot_dimension_numbers<[1], [0], [0], [1], [0, 0, 1, 1], [], []>} : vector<8x256xbf16>, vector<256x128xbf16>, vector<8x128xf32> -> vector<8x128xf32>
    %c0_15 = arith.constant 0 : index
    %c0_16 = arith.constant 0 : index
    %20 = vector.load %arg7[%c0_15, %c0_16] : memref<1x128xf32, #tpu.memory_space<vmem>>, vector<1x128xf32>
    %21 = vector.broadcast %20 : vector<1x128xf32> to vector<8x128xf32>
    %22 = arith.addf %19, %21 : vector<8x128xf32>
    %23 = arith.truncf %22 : vector<8x128xf32> to vector<8x128xbf16>
    %c0_17 = arith.constant 0 : index
    %c0_18 = arith.constant 0 : index
    %24 = vector.load %arg8[%c0_17, %c0_18] : memref<8x128xbf16, #tpu.memory_space<vmem>>, vector<8x128xbf16>
    tpu.vector_store %arg8[%c0_17, %c0_18], %23 {strides = array<i32>} : memref<8x128xbf16, #tpu.memory_space<vmem>>, vector<8x128xbf16>,
    return
  }
  func.func @transform_0(%arg0: i32) -> (i32, i32) {
    %c0_i32 = arith.constant 0 : i32
    %c0_i32_0 = arith.constant 0 : i32
    return %arg0, %c0_i32 : i32, i32
  }
  func.func @transform_1(%arg0: i32) -> (i32, i32) {
    %c0_i32 = arith.constant 0 : i32
    %c0_i32_0 = arith.constant 0 : i32
    %c0_i32_1 = arith.constant 0 : i32
    return %c0_i32, %c0_i32_0 : i32, i32
  }
  func.func @transform_2(%arg0: i32) -> (i32, i32) {
    %c0_i32 = arith.constant 0 : i32
    %c0_i32_0 = arith.constant 0 : i32
    %c0_i32_1 = arith.constant 0 : i32
    return %c0_i32, %c0_i32_0 : i32, i32
  }
  func.func @transform_3(%arg0: i32) -> (i32, i32) {
    %c0_i32 = arith.constant 0 : i32
    %c0_i32_0 = arith.constant 0 : i32
    %c0_i32_1 = arith.constant 0 : i32
    return %c0_i32, %c0_i32_0 : i32, i32
  }
  func.func @transform_4(%arg0: i32) -> (i32, i32) {
    %c0_i32 = arith.constant 0 : i32
    %c0_i32_0 = arith.constant 0 : i32
    %c0_i32_1 = arith.constant 0 : i32
    return %c0_i32, %c0_i32_0 : i32, i32
  }
  func.func @transform_5(%arg0: i32) -> (i32, i32) {
    %c0_i32 = arith.constant 0 : i32
    %c0_i32_0 = arith.constant 0 : i32
    %c0_i32_1 = arith.constant 0 : i32
    return %c0_i32, %c0_i32_0 : i32, i32
  }
  func.func @transform_6(%arg0: i32) -> (i32, i32) {
    %c0_i32 = arith.constant 0 : i32
    %c0_i32_0 = arith.constant 0 : i32
    %c0_i32_1 = arith.constant 0 : i32
    return %c0_i32, %c0_i32_0 : i32, i32
  }
  func.func @transform_7(%arg0: i32) -> (i32, i32) {
    %c0_i32 = arith.constant 0 : i32
    %c0_i32_0 = arith.constant 0 : i32
    return %arg0, %c0_i32 : i32, i32
  }
}

</mosaic_0001>

<bundles_post_ra>
// kernel: adaptive_regularized_forward.1
= control target key start
LH: loop header
LB: loop body
LE: loop exit
PB: predicated region body
PF: predicated region fallthrough
CT: control target
= control target key end

     0   :  { %12 = vsyncpa [#allocation3], 0  ;;  %s3022_s24 = smov [#allocation2]   ;;  %s3401_s0 = inlined_call_operand.vmem [shape: f32[8,784], index: 0, kind: input, shape index: {}]   ;;  %s3402_s1 = inlined_call_operand.hbm [shape: bf16[784,512], index: 1, kind: input, shape index: {}]   ;;  %s3403_s2 = inlined_call_operand.vmem [shape: f32[1,512], index: 2, kind: input, shape index: {}]   ;;  %s3404_s3 = inlined_call_operand.vmem [shape: bf16[512,256], index: 3, kind: input, shape index: {}]   ;;  %s3405_s4 = inlined_call_operand.vmem [shape: f32[1,256], index: 4, kind: input, shape index: {}]   ;;  %s3406_s5 = inlined_call_operand.vmem [shape: bf16[256,128], index: 5, kind: input, shape index: {}]   ;;  %s3407_s6 = inlined_call_operand.vmem [shape: f32[1,128], index: 6, kind: input, shape index: {}]   ;;  %s3408_s7 = inlined_call_operand.vmem [shape: bf16[8,128], index: 7, kind: output, shape index: {}]  }
   0x1   :  { %s20_s25 = sshll.u32 %s3022_s24, 4  ;;  %s2998_s28 = scalar_lea.hbm %s3402_s1, 25088  ;;  %s21_s25 = int_to_ptr.vmem [resolvable:$true] %s20_s25 }
   0x2   :  { %p2999_p0 = scmp.ne.s32.totalorder %s3402_s1, %s2998_s28  ;;  %p3002_p1 = scmp.lt.u32.totalorder %s2998_s28, %s3402_s1 }
   0x4   :  { %p3004_p2 = pnand %p3002_p1, %p2999_p0 }
   0x6   :  { %3007 = shalt.err (!%p3004_p2)
}
   0x7   :  { %s3008_s10 = scalar_lea.vmem %s21_s25, 25088  ;;  %p3013_p4 = scmp.lt.s32.totalorder %s21_s25, %s21_s25 }
   0x8   :  { %p3009_p3 = scmp.ne.s32.totalorder %s21_s25, %s3008_s10  ;;  %p3014_p5 = scmp.lt.s32.totalorder %s3008_s10, %s3008_s10 }
   0xa   :  { %p3015_p6 = por %p3014_p5, %p3013_p4 }
   0xc   :  { %p3016_p7 = pnand %p3015_p6, %p3009_p3 }
   0xe   :  { %3019 = shalt.err (!%p3016_p7)
}
   0xf   :  { %s3023_s11 = smov 256   ;;  %s3024_s12 = smov 16  }
  0x10   :  { %26 = dma.hbm_to_vmem [thread:$0]  %s3402_s1, 25088, %s21_s25, [#allocation3], %s3023_s11, %s3023_s11, %s3024_s12  }
  0x11   :  { %3020 = dma.done.wait [#allocation3], 25088  }
  0x12   :  { %3021 = vsyncadd [#allocation3], 4294942208  ;;  %v2592_v0 = vld [vmem:[#allocation2 + $0x4] ss:$16 sps:$4 sm:$0xff]   ;;  %v2596_v2 = vld [vmem:[#allocation2] ss:$16 sps:$4 sm:$0xff]  }
  0x13   :  { %v2594_v1 = vld [vmem:[#allocation2 + $0x204] ss:$16 sps:$4 sm:$0xff]   ;;  %1257 = vmatprep.subr.bf16.mxu1 %v2592_v0  ;;  %v2597_v3 = vld [vmem:[#allocation2 + $0x200] ss:$16 sps:$4 sm:$0xff]   ;;  %v42_v46 = vld [vmem:[%s3401_s0 + $0x8] sm:$0xff]  ;;  %vm1253_vm0 = vcmask 130048  }
  0x14   :  { %1298 = vmatprep.subr.bf16.mxu0 %v2594_v1  ;;  %v2598_v4 = vld [vmem:[#allocation2 + $0x24] ss:$16 sps:$4 sm:$0xff]   ;;  %1258 = vmatpush1.bf16.msra.mxu1 %v2596_v2  ;;  %v2602_v6 = vld [vmem:[#allocation2 + $0x20] ss:$16 sps:$4 sm:$0xff]   ;;  %v3081_v48 = vpack.c.bf16 %v42_v46, %v42_v46  ;;  %v44_v49 = vld [vmem:[%s3401_s0 + $0x18] sm:$0xff] }
  0x15   :  { %1299 = vmatpush1.bf16.msra.mxu0 %v2597_v3  ;;  %v2600_v5 = vld [vmem:[#allocation2 + $0x224] ss:$16 sps:$4 sm:$0xff]   ;;  %1259 = vmatprep.subr.bf16.mxu1 %v2598_v4  ;;  %v2603_v7 = vld [vmem:[#allocation2 + $0x220] ss:$16 sps:$4 sm:$0xff]   ;;  %v3086_v52 = vpack.c.bf16 %v44_v49, %v44_v49  ;;  %v2745_v49 = vld [vmem:[#allocation2 + $0x128] ss:$16 sps:$4 sm:$0xff]  }
  0x16   :  { %1300 = vmatprep.subr.bf16.mxu0 %v2600_v5  ;;  %v2604_v8 = vld [vmem:[#allocation2 + $0x44] ss:$16 sps:$4 sm:$0xff]   ;;  %v2608_v10 = vld [vmem:[#allocation2 + $0x40] ss:$16 sps:$4 sm:$0xff]   ;;  %1289 = vmatprep.mubr.bf16.mxu1 %v3081_v48 }
  0x17   :  { %v2606_v9 = vld [vmem:[#allocation2 + $0x244] ss:$16 sps:$4 sm:$0xff]   ;;  %v2609_v11 = vld [vmem:[#allocation2 + $0x240] ss:$16 sps:$4 sm:$0xff]   ;;  %1330 = vmatprep.mubr.bf16.mxu0 %v3086_v52 }
  0x18   :  { %1260 = vmatpush1.bf16.msra.mxu1 %v2602_v6  ;;  %v2610_v12 = vld [vmem:[#allocation2 + $0x64] ss:$16 sps:$4 sm:$0xff]   ;;  %v2614_v14 = vld [vmem:[#allocation2 + $0x60] ss:$16 sps:$4 sm:$0xff]  }
  0x19   :  { %1301 = vmatpush1.bf16.msra.mxu0 %v2603_v7  ;;  %1261 = vmatprep.subr.bf16.mxu1 %v2604_v8  ;;  %v2612_v13 = vld [vmem:[#allocation2 + $0x264] ss:$16 sps:$4 sm:$0xff]   ;;  %v2615_v15 = vld [vmem:[#allocation2 + $0x260] ss:$16 sps:$4 sm:$0xff]   ;;  %v2693_v7 = vld [vmem:[#allocation2 + $0xc] ss:$16 sps:$4 sm:$0xff]  }
  0x1a   :  { %1302 = vmatprep.subr.bf16.mxu0 %v2606_v9  ;;  %v2616_v16 = vld [vmem:[#allocation2 + $0x84] ss:$16 sps:$4 sm:$0xff]   ;;  %v2620_v18 = vld [vmem:[#allocation2 + $0x80] ss:$16 sps:$4 sm:$0xff]  }
  0x1b   :  { %v2618_v17 = vld [vmem:[#allocation2 + $0x284] ss:$16 sps:$4 sm:$0xff]   ;;  %v2621_v19 = vld [vmem:[#allocation2 + $0x280] ss:$16 sps:$4 sm:$0xff]  }
  0x1c   :  { %1262 = vmatpush1.bf16.msra.mxu1 %v2608_v10  ;;  %v2622_v20 = vld [vmem:[#allocation2 + $0xa4] ss:$16 sps:$4 sm:$0xff]   ;;  %v2626_v22 = vld [vmem:[#allocation2 + $0xa0] ss:$16 sps:$4 sm:$0xff]   ;;  %v2691_v10 = vld [vmem:[#allocation2 + $0x8] ss:$16 sps:$4 sm:$0xff]  }
  0x1d   :  { %1303 = vmatpush1.bf16.msra.mxu0 %v2609_v11  ;;  %1263 = vmatprep.subr.bf16.mxu1 %v2610_v12  ;;  %v2624_v21 = vld [vmem:[#allocation2 + $0x2a4] ss:$16 sps:$4 sm:$0xff]   ;;  %v2627_v23 = vld [vmem:[#allocation2 + $0x2a0] ss:$16 sps:$4 sm:$0xff]  }
  0x1e   :  { %1304 = vmatprep.subr.bf16.mxu0 %v2612_v13  ;;  %v2628_v24 = vld [vmem:[#allocation2 + $0xc4] ss:$16 sps:$4 sm:$0xff]   ;;  %v2632_v26 = vld [vmem:[#allocation2 + $0xc0] ss:$16 sps:$4 sm:$0xff]   ;;  %v2699_v13 = vld [vmem:[#allocation2 + $0x2c] ss:$16 sps:$4 sm:$0xff]  }
  0x1f   :  { %v2630_v25 = vld [vmem:[#allocation2 + $0x2c4] ss:$16 sps:$4 sm:$0xff]   ;;  %v2633_v27 = vld [vmem:[#allocation2 + $0x2c0] ss:$16 sps:$4 sm:$0xff]  }
  0x20   :  { %1264 = vmatpush1.bf16.msra.mxu1 %v2614_v14  ;;  %v2634_v28 = vld [vmem:[#allocation2 + $0xe4] ss:$16 sps:$4 sm:$0xff]   ;;  %v2638_v30 = vld [vmem:[#allocation2 + $0xe0] ss:$16 sps:$4 sm:$0xff]  }
  0x21   :  { %1305 = vmatpush1.bf16.msra.mxu0 %v2615_v15  ;;  %1265 = vmatprep.subr.bf16.mxu1 %v2616_v16  ;;  %v2636_v29 = vld [vmem:[#allocation2 + $0x2e4] ss:$16 sps:$4 sm:$0xff]   ;;  %v2639_v31 = vld [vmem:[#allocation2 + $0x2e0] ss:$16 sps:$4 sm:$0xff]   ;;  %v2697_v15 = vld [vmem:[#allocation2 + $0x28] ss:$16 sps:$4 sm:$0xff]  }
  0x22   :  { %1306 = vmatprep.subr.bf16.mxu0 %v2618_v17  ;;  %v2640_v32 = vld [vmem:[#allocation2 + $0x104] ss:$16 sps:$4 sm:$0xff]   ;;  %v2644_v34 = vld [vmem:[#allocation2 + $0x100] ss:$16 sps:$4 sm:$0xff]   ;;  %v2705_v17 = vld [vmem:[#allocation2 + $0x4c] ss:$16 sps:$4 sm:$0xff]  }
  0x23   :  { %v2642_v33 = vld [vmem:[#allocation2 + $0x304] ss:$16 sps:$4 sm:$0xff]   ;;  %v2645_v35 = vld [vmem:[#allocation2 + $0x300] ss:$16 sps:$4 sm:$0xff]  }
  0x24   :  { %1266 = vmatpush1.bf16.msra.mxu1 %v2620_v18  ;;  %v2646_v36 = vld [vmem:[#allocation2 + $0x124] ss:$16 sps:$4 sm:$0xff]   ;;  %v2650_v38 = vld [vmem:[#allocation2 + $0x120] ss:$16 sps:$4 sm:$0xff]  }
  0x25   :  { %1307 = vmatpush1.bf16.msra.mxu0 %v2621_v19  ;;  %1267 = vmatprep.subr.bf16.mxu1 %v2622_v20  ;;  %v2648_v37 = vld [vmem:[#allocation2 + $0x324] ss:$16 sps:$4 sm:$0xff]   ;;  %v2651_v39 = vld [vmem:[#allocation2 + $0x320] ss:$16 sps:$4 sm:$0xff]   ;;  %v2703_v19 = vld [vmem:[#allocation2 + $0x48] ss:$16 sps:$4 sm:$0xff]  }
  0x26   :  { %1308 = vmatprep.subr.bf16.mxu0 %v2624_v21  ;;  %v2652_v40 = vld [vmem:[#allocation2 + $0x144] ss:$16 sps:$4 sm:$0xff]   ;;  %v2656_v42 = vld [vmem:[#allocation2 + $0x140] ss:$16 sps:$4 sm:$0xff]   ;;  %v2711_v21 = vld [vmem:[#allocation2 + $0x6c] ss:$16 sps:$4 sm:$0xff]  }
  0x27   :  { %v2654_v41 = vld [vmem:[#allocation2 + $0x344] ss:$16 sps:$4 sm:$0xff]   ;;  %v2657_v43 = vld [vmem:[#allocation2 + $0x340] ss:$16 sps:$4 sm:$0xff]  }
  0x28   :  { %1268 = vmatpush1.bf16.msra.mxu1 %v2626_v22  ;;  %v2658_v44 = vld [vmem:[#allocation2 + $0x164] ss:$16 sps:$4 sm:$0xff]   ;;  %v2662_v47 = vld [vmem:[#allocation2 + $0x160] ss:$16 sps:$4 sm:$0xff]  }
  0x29   :  { %1309 = vmatpush1.bf16.msra.mxu0 %v2627_v23  ;;  %1269 = vmatprep.subr.bf16.mxu1 %v2628_v24  ;;  %v2660_v45 = vld [vmem:[#allocation2 + $0x364] ss:$16 sps:$4 sm:$0xff]   ;;  %v2663_v50 = vld [vmem:[#allocation2 + $0x360] ss:$16 sps:$4 sm:$0xff]   ;;  %v2709_v23 = vld [vmem:[#allocation2 + $0x68] ss:$16 sps:$4 sm:$0xff]  }
  0x2a   :  { %1310 = vmatprep.subr.bf16.mxu0 %v2630_v25  ;;  %v2664_v51 = vld [vmem:[#allocation2 + $0x184] ss:$16 sps:$4 sm:$0xff]   ;;  %v2668_v54 = vld [vmem:[#allocation2 + $0x180] ss:$16 sps:$4 sm:$0xff]   ;;  %v2717_v25 = vld [vmem:[#allocation2 + $0x8c] ss:$16 sps:$4 sm:$0xff]  }
  0x2b   :  { %v2666_v53 = vld [vmem:[#allocation2 + $0x384] ss:$16 sps:$4 sm:$0xff]   ;;  %v2669_v55 = vld [vmem:[#allocation2 + $0x380] ss:$16 sps:$4 sm:$0xff]  }
  0x2c   :  { %1270 = vmatpush1.bf16.msra.mxu1 %v2632_v26  ;;  %v2670_v56 = vld [vmem:[#allocation2 + $0x1a4] ss:$16 sps:$4 sm:$0xff]   ;;  %v2674_v58 = vld [vmem:[#allocation2 + $0x1a0] ss:$16 sps:$4 sm:$0xff]  }
  0x2d   :  { %1311 = vmatpush1.bf16.msra.mxu0 %v2633_v27  ;;  %1271 = vmatprep.subr.bf16.mxu1 %v2634_v28  ;;  %v2672_v57 = vld [vmem:[#allocation2 + $0x3a4] ss:$16 sps:$4 sm:$0xff]   ;;  %v2675_v59 = vld [vmem:[#allocation2 + $0x3a0] ss:$16 sps:$4 sm:$0xff]   ;;  %v2715_v27 = vld [vmem:[#allocation2 + $0x88] ss:$16 sps:$4 sm:$0xff]  }
  0x2e   :  { %1312 = vmatprep.subr.bf16.mxu0 %v2636_v29  ;;  %v2676_v60 = vld [vmem:[#allocation2 + $0x1c4] ss:$16 sps:$4 sm:$0xff]   ;;  %v2680_v62 = vld [vmem:[#allocation2 + $0x1c0] ss:$16 sps:$4 sm:$0xff]   ;;  %v2723_v29 = vld [vmem:[#allocation2 + $0xac] ss:$16 sps:$4 sm:$0xff]  }
  0x2f   :  { %v2678_v61 = vld [vmem:[#allocation2 + $0x3c4] ss:$16 sps:$4 sm:$0xff]   ;;  %v2681_v63 = vld [vmem:[#allocation2 + $0x3c0] ss:$16 sps:$4 sm:$0xff]  }
  0x30   :  { %1272 = vmatpush1.bf16.msra.mxu1 %v2638_v30  ;;  %v2682_v0 = vld [vmem:[#allocation2 + $0x1e4] ss:$16 sps:$4 sm:$0xff]   ;;  %v2686_v2 = vld [vmem:[#allocation2 + $0x1e0] ss:$16 sps:$4 sm:$0xff]  }
  0x31   :  { %1313 = vmatpush1.bf16.msra.mxu0 %v2639_v31  ;;  %1273 = vmatprep.subr.bf16.mxu1 %v2640_v32  ;;  %v2684_v1 = vld [vmem:[#allocation2 + $0x3e4] ss:$16 sps:$4 sm:$0xff]   ;;  %v2687_v3 = vld [vmem:[#allocation2 + $0x3e0] ss:$16 sps:$4 sm:$0xff]   ;;  %v2721_v31 = vld [vmem:[#allocation2 + $0xa8] ss:$16 sps:$4 sm:$0xff]  }
  0x32   :  { %1314 = vmatprep.subr.bf16.mxu0 %v2642_v33  ;;  %v41_v4 = vld [vmem:[%s3401_s0] sm:$0xff]  ;;  %v43_v6 = vld [vmem:[%s3401_s0 + $0x10] sm:$0xff]  ;;  %v2729_v33 = vld [vmem:[#allocation2 + $0xcc] ss:$16 sps:$4 sm:$0xff]  }
  0x33   :  { %v2690_v5 = vld [vmem:[#allocation2 + $0x404] ss:$16 sps:$4 sm:$0xff]   ;;  %v3096_v8 = vpack.c.bf16 %v41_v4, %v41_v4  ;;  %v2688_v9 = vld [vmem:[#allocation2 + $0x400] ss:$16 sps:$4 sm:$0xff]   ;;  %v3098_v11 = vpack.c.bf16 %v43_v6, %v43_v6  ;;  %v2777_v4 = vld [vmem:[#allocation2 + $0x1cc] ss:$16 sps:$4 sm:$0xff]  }
  0x34   :  { %1274 = vmatpush1.bf16.msra.mxu1 %v2644_v34  ;;  %v2696_v12 = vld [vmem:[#allocation2 + $0x424] ss:$16 sps:$4 sm:$0xff]   ;;  %v2694_v14 = vld [vmem:[#allocation2 + $0x420] ss:$16 sps:$4 sm:$0xff]   ;;  %v46_v34 = vld [vmem:[%s3401_s0 + $0x28] sm:$0xff] }
  0x35   :  { %1315 = vmatpush1.bf16.msra.mxu0 %v2645_v35  ;;  %1275 = vmatprep.subr.bf16.mxu1 %v2646_v36  ;;  %v2702_v16 = vld [vmem:[#allocation2 + $0x444] ss:$16 sps:$4 sm:$0xff]   ;;  %v2700_v18 = vld [vmem:[#allocation2 + $0x440] ss:$16 sps:$4 sm:$0xff]   ;;  %v3106_v35 = vpack.c.bf16 %v46_v34, %v46_v34  ;;  %v2775_v6 = vld [vmem:[#allocation2 + $0x1c8] ss:$16 sps:$4 sm:$0xff]  }
  0x36   :  { %1316 = vmatprep.subr.bf16.mxu0 %v2648_v37  ;;  %v2708_v20 = vld [vmem:[#allocation2 + $0x464] ss:$16 sps:$4 sm:$0xff]   ;;  %v2706_v22 = vld [vmem:[#allocation2 + $0x460] ss:$16 sps:$4 sm:$0xff]   ;;  %v2727_v37 = vld [vmem:[#allocation2 + $0xc8] ss:$16 sps:$4 sm:$0xff]  }
  0x37   :  { %v2714_v24 = vld [vmem:[#allocation2 + $0x484] ss:$16 sps:$4 sm:$0xff]   ;;  %v2712_v26 = vld [vmem:[#allocation2 + $0x480] ss:$16 sps:$4 sm:$0xff]   ;;  %v2810_v34 = vld [vmem:[#allocation2 + $0x2ec] ss:$16 sps:$4 sm:$0xff]  }
  0x38   :  { %1276 = vmatpush1.bf16.msra.mxu1 %v2650_v38  ;;  %v2720_v28 = vld [vmem:[#allocation2 + $0x4a4] ss:$16 sps:$4 sm:$0xff]   ;;  %v2718_v30 = vld [vmem:[#allocation2 + $0x4a0] ss:$16 sps:$4 sm:$0xff]  }
  0x39   :  { %1317 = vmatpush1.bf16.msra.mxu0 %v2651_v39  ;;  %1277 = vmatprep.subr.bf16.mxu1 %v2652_v40  ;;  %v2726_v32 = vld [vmem:[#allocation2 + $0x4c4] ss:$16 sps:$4 sm:$0xff]   ;;  %v2724_v36 = vld [vmem:[#allocation2 + $0x4c0] ss:$16 sps:$4 sm:$0xff]   ;;  %v2735_v39 = vld [vmem:[#allocation2 + $0xec] ss:$16 sps:$4 sm:$0xff]  }
  0x3a   :  { %1318 = vmatprep.subr.bf16.mxu0 %v2654_v41  ;;  %v2732_v38 = vld [vmem:[#allocation2 + $0x4e4] ss:$16 sps:$4 sm:$0xff]   ;;  %v2730_v40 = vld [vmem:[#allocation2 + $0x4e0] ss:$16 sps:$4 sm:$0xff]   ;;  %v2733_v41 = vld [vmem:[#allocation2 + $0xe8] ss:$16 sps:$4 sm:$0xff]  }
  0x3b   :  { %v2744_v46 = vld [vmem:[#allocation2 + $0x524] ss:$16 sps:$4 sm:$0xff]  }
  0x3c   :  { %1278 = vmatpush1.bf16.msra.mxu1 %v2656_v42  ;;  %v2738_v42 = vld [vmem:[#allocation2 + $0x504] ss:$16 sps:$4 sm:$0xff]  }
  0x3d   :  { %1319 = vmatpush1.bf16.msra.mxu0 %v2657_v43  ;;  %1279 = vmatprep.subr.bf16.mxu1 %v2658_v44  ;;  %v2741_v43 = vld [vmem:[#allocation2 + $0x10c] ss:$16 sps:$4 sm:$0xff]   ;;  %v2736_v44 = vld [vmem:[#allocation2 + $0x500] ss:$16 sps:$4 sm:$0xff]  }
  0x3e   :  { %1320 = vmatprep.subr.bf16.mxu0 %v2660_v45  ;;  %v2739_v45 = vld [vmem:[#allocation2 + $0x108] ss:$16 sps:$4 sm:$0xff]  }
  0x40   :  { %1280 = vmatpush1.bf16.msra.mxu1 %v2662_v47  ;;  %v2747_v47 = vld [vmem:[#allocation2 + $0x12c] ss:$16 sps:$4 sm:$0xff]  }
  0x41   :  { %1321 = vmatpush1.bf16.msra.mxu0 %v2663_v50  ;;  %1281 = vmatprep.subr.bf16.mxu1 %v2664_v51  ;;  %v2750_v50 = vld [vmem:[#allocation2 + $0x544] ss:$16 sps:$4 sm:$0xff]   ;;  %v2753_v51 = vld [vmem:[#allocation2 + $0x14c] ss:$16 sps:$4 sm:$0xff]  }
  0x42   :  { %1322 = vmatprep.subr.bf16.mxu0 %v2666_v53  ;;  %v2748_v53 = vld [vmem:[#allocation2 + $0x540] ss:$16 sps:$4 sm:$0xff]  }
  0x44   :  { %1282 = vmatpush1.bf16.msra.mxu1 %v2668_v54  ;;  %v2751_v54 = vld [vmem:[#allocation2 + $0x148] ss:$16 sps:$4 sm:$0xff]  }
  0x45   :  { %1323 = vmatpush1.bf16.msra.mxu0 %v2669_v55  ;;  %1283 = vmatprep.subr.bf16.mxu1 %v2670_v56  ;;  %v2756_v55 = vld [vmem:[#allocation2 + $0x564] ss:$16 sps:$4 sm:$0xff]   ;;  %v2759_v56 = vld [vmem:[#allocation2 + $0x16c] ss:$16 sps:$4 sm:$0xff]  }
  0x46   :  { %1324 = vmatprep.subr.bf16.mxu0 %v2672_v57  ;;  %v2754_v57 = vld [vmem:[#allocation2 + $0x560] ss:$16 sps:$4 sm:$0xff]  }
  0x48   :  { %1284 = vmatpush1.bf16.msra.mxu1 %v2674_v58  ;;  %v2757_v58 = vld [vmem:[#allocation2 + $0x168] ss:$16 sps:$4 sm:$0xff]  }
  0x49   :  { %1325 = vmatpush1.bf16.msra.mxu0 %v2675_v59  ;;  %1285 = vmatprep.subr.bf16.mxu1 %v2676_v60  ;;  %v2762_v59 = vld [vmem:[#allocation2 + $0x584] ss:$16 sps:$4 sm:$0xff]   ;;  %v2765_v60 = vld [vmem:[#allocation2 + $0x18c] ss:$16 sps:$4 sm:$0xff]  }
  0x4a   :  { %1326 = vmatprep.subr.bf16.mxu0 %v2678_v61  ;;  %v2760_v61 = vld [vmem:[#allocation2 + $0x580] ss:$16 sps:$4 sm:$0xff]  }
  0x4c   :  { %1286 = vmatpush1.bf16.msra.mxu1 %v2680_v62  ;;  %v2763_v62 = vld [vmem:[#allocation2 + $0x188] ss:$16 sps:$4 sm:$0xff]  }
  0x4d   :  { %1327 = vmatpush1.bf16.msra.mxu0 %v2681_v63  ;;  %1287 = vmatprep.subr.bf16.mxu1 %v2682_v0  ;;  %v2768_v63 = vld [vmem:[#allocation2 + $0x5a4] ss:$16 sps:$4 sm:$0xff]   ;;  %v2771_v0 = vld [vmem:[#allocation2 + $0x1ac] ss:$16 sps:$4 sm:$0xff]  }
  0x4e   :  { %1328 = vmatprep.subr.bf16.mxu0 %v2684_v1  ;;  %v2766_v1 = vld [vmem:[#allocation2 + $0x5a0] ss:$16 sps:$4 sm:$0xff]  }
  0x50   :  { %1288 = vmatpush1.bf16.msra.mxu1 %v2686_v2  ;;  %v2769_v2 = vld [vmem:[#allocation2 + $0x1a8] ss:$16 sps:$4 sm:$0xff]  }
  0x51   :  { %1329 = vmatpush1.bf16.msra.mxu0 %v2687_v3  ;;  %1421 = vmatprep.subr.bf16.mxu1 %v2693_v7  ;;  %v2774_v3 = vld [vmem:[#allocation2 + $0x5c4] ss:$16 sps:$4 sm:$0xff]  }
  0x52   :  { %1339 = vmatprep.subr.bf16.mxu0 %v2690_v5  ;;  %v2772_v5 = vld [vmem:[#allocation2 + $0x5c0] ss:$16 sps:$4 sm:$0xff]   ;;  %v2780_v7 = vld [vmem:[#allocation2 + $0x5e4] ss:$16 sps:$4 sm:$0xff]  }
  0x53   :  { %1290 = vmatmul.mubr.bf16.vlgmr.msra.gmra.mrb[0].mxu1 %v3096_v8 }
  0x54   :  { %1331 = vmatmul.mubr.bf16.vlgmr.msra.gmra.mrb[0].mxu0 %v3098_v11  ;;  %1422 = vmatpush1.bf16.msra.mxu1 %v2691_v10  ;;  %v2778_v10 = vld [vmem:[#allocation2 + $0x5e0] ss:$16 sps:$4 sm:$0xff]  }
  0x55   :  { %1340 = vmatpush1.bf16.msra.mxu0 %v2688_v9  ;;  %1423 = vmatprep.subr.bf16.mxu1 %v2699_v13  ;;  %v2783_v9 = vld [vmem:[#allocation2 + $0x1ec] ss:$16 sps:$4 sm:$0xff]   ;;  %v45_v13 = vld [vmem:[%s3401_s0 + $0x20] sm:$0xff] }
  0x56   :  { %1341 = vmatprep.subr.bf16.mxu0 %v2696_v12  ;;  %1453 = vmatprep.mubr.bf16.mxu1 %v3081_v48  ;;  %v2742_v48 = vld [vmem:[#allocation2 + $0x520] ss:$16 sps:$4 sm:$0xff]   ;;  %v2781_v12 = vld [vmem:[#allocation2 + $0x1e8] ss:$16 sps:$4 sm:$0xff]  }
  0x57   :  { %1371 = vmatprep.mubr.bf16.mxu0 %v3106_v35 }
  0x58   :  { %1424 = vmatpush1.bf16.msra.mxu1 %v2697_v15  ;;  %v2792_v15 = vld [vmem:[#allocation2 + $0x604] ss:$16 sps:$4 sm:$0xff]  }
  0x59   :  { %1342 = vmatpush1.bf16.msra.mxu0 %v2694_v14  ;;  %1425 = vmatprep.subr.bf16.mxu1 %v2705_v17  ;;  %v2786_v14 = vld [vmem:[#allocation2 + $0x20c] ss:$16 sps:$4 sm:$0xff]   ;;  %v2784_v17 = vld [vmem:[#allocation2 + $0x208] ss:$16 sps:$4 sm:$0xff]  }
  0x5a   :  { %1343 = vmatprep.subr.bf16.mxu0 %v2702_v16  ;;  %v3112_v16 = vpack.c.bf16 %v45_v13, %v45_v13  ;;  %v2918_v13 = vld [vmem:[%s3404_s3 + $0xa4] ss:$8 sps:$4 sm:$0xff]  }
  0x5c   :  { %1426 = vmatpush1.bf16.msra.mxu1 %v2703_v19  ;;  %v2789_v19 = vld [vmem:[#allocation2 + $0x22c] ss:$16 sps:$4 sm:$0xff]  }
  0x5d   :  { %1344 = vmatpush1.bf16.msra.mxu0 %v2700_v18  ;;  %1427 = vmatprep.subr.bf16.mxu1 %v2711_v21  ;;  %v2790_v18 = vld [vmem:[#allocation2 + $0x600] ss:$16 sps:$4 sm:$0xff]   ;;  %v2787_v21 = vld [vmem:[#allocation2 + $0x228] ss:$16 sps:$4 sm:$0xff]  }
  0x5e   :  { %1345 = vmatprep.subr.bf16.mxu0 %v2708_v20  ;;  %v2882_v20 = vld [vmem:[#allocation2 + $0x60c] ss:$16 sps:$4 sm:$0xff]  }
  0x60   :  { %1428 = vmatpush1.bf16.msra.mxu1 %v2709_v23  ;;  %v3025_v23 = vmov 0  }
  0x61   :  { %1346 = vmatpush1.bf16.msra.mxu0 %v2706_v22  ;;  %1429 = vmatprep.subr.bf16.mxu1 %v2717_v25  ;;  %v2795_v22 = vld [vmem:[#allocation2 + $0x24c] ss:$16 sps:$4 sm:$0xff]   ;;  %v47_v25 = vld [vmem:[%s3401_s0 + $0x30] sm:$0xff] }
  0x62   :  { %1347 = vmatprep.subr.bf16.mxu0 %v2714_v24  ;;  %v2793_v24 = vld [vmem:[#allocation2 + $0x248] ss:$16 sps:$4 sm:$0xff]  }
  0x64   :  { %1430 = vmatpush1.bf16.msra.mxu1 %v2715_v27  ;;  %v2880_v27 = vld [vmem:[#allocation2 + $0x608] ss:$16 sps:$4 sm:$0xff]  }
  0x65   :  { %1348 = vmatpush1.bf16.msra.mxu0 %v2712_v26  ;;  %1431 = vmatprep.subr.bf16.mxu1 %v2723_v29  ;;  %v2798_v26 = vld [vmem:[#allocation2 + $0x26c] ss:$16 sps:$4 sm:$0xff]  }
  0x66   :  { %1349 = vmatprep.subr.bf16.mxu0 %v2720_v28  ;;  %v54_v28 = vpack.c.bf16 %v47_v25, %v47_v25  ;;  %v2801_v29 = vld [vmem:[#allocation2 + $0x28c] ss:$16 sps:$4 sm:$0xff]   ;;  %v2844_v25 = vld [vmem:[#allocation2 + $0x468] ss:$16 sps:$4 sm:$0xff]  }
  0x68   :  { %1432 = vmatpush1.bf16.msra.mxu1 %v2721_v31  ;;  %v2804_v31 = vld [vmem:[#allocation2 + $0x2ac] ss:$16 sps:$4 sm:$0xff]  }
  0x69   :  { %1350 = vmatpush1.bf16.msra.mxu0 %v2718_v30  ;;  %1433 = vmatprep.subr.bf16.mxu1 %v2729_v33  ;;  %v2799_v30 = vld [vmem:[#allocation2 + $0x288] ss:$16 sps:$4 sm:$0xff]  }
  0x6a   :  { %1351 = vmatprep.subr.bf16.mxu0 %v2726_v32  ;;  %v2802_v32 = vld [vmem:[#allocation2 + $0x2a8] ss:$16 sps:$4 sm:$0xff]  }
  0x6b   :  { %v2805_v33 = vld [vmem:[#allocation2 + $0x2c8] ss:$16 sps:$4 sm:$0xff]  }
  0x6c   :  { %1434 = vmatpush1.bf16.msra.mxu1 %v2727_v37  ;;  %v2888_v37 = vld [vmem:[%s3404_s3 + $0x4] ss:$8 sps:$4 sm:$0xff]  }
  0x6d   :  { %1352 = vmatpush1.bf16.msra.mxu0 %v2724_v36  ;;  %1435 = vmatprep.subr.bf16.mxu1 %v2735_v39  ;;  %v2886_v36 = vld [vmem:[%s3404_s3] ss:$8 sps:$4 sm:$0xff]  }
  0x6e   :  { %1353 = vmatprep.subr.bf16.mxu0 %v2732_v38  ;;  %v2891_v38 = vld [vmem:[%s3404_s3 + $0x14] ss:$8 sps:$4 sm:$0xff]   ;;  %v2808_v39 = vld [vmem:[#allocation2 + $0x2e8] ss:$16 sps:$4 sm:$0xff]  }
  0x70   :  { %1436 = vmatpush1.bf16.msra.mxu1 %v2733_v41  ;;  %v2813_v41 = vld [vmem:[#allocation2 + $0x30c] ss:$16 sps:$4 sm:$0xff]  }
  0x71   :  { %1354 = vmatpush1.bf16.msra.mxu0 %v2730_v40  ;;  %1437 = vmatprep.subr.bf16.mxu1 %v2741_v43  ;;  %v2889_v40 = vld [vmem:[%s3404_s3 + $0x10] ss:$8 sps:$4 sm:$0xff]  }
  0x72   :  { %1355 = vmatprep.subr.bf16.mxu0 %v2738_v42  ;;  %v2894_v42 = vld [vmem:[%s3404_s3 + $0x24] ss:$8 sps:$4 sm:$0xff]   ;;  %v2811_v43 = vld [vmem:[#allocation2 + $0x308] ss:$16 sps:$4 sm:$0xff]  }
  0x74   :  { %1438 = vmatpush1.bf16.msra.mxu1 %v2739_v45  ;;  %v2816_v45 = vld [vmem:[#allocation2 + $0x32c] ss:$16 sps:$4 sm:$0xff]  }
  0x75   :  { %1356 = vmatpush1.bf16.msra.mxu0 %v2736_v44  ;;  %1439 = vmatprep.subr.bf16.mxu1 %v2747_v47  ;;  %v2892_v44 = vld [vmem:[%s3404_s3 + $0x20] ss:$8 sps:$4 sm:$0xff]  }
  0x76   :  { %1357 = vmatprep.subr.bf16.mxu0 %v2744_v46  ;;  %v2897_v46 = vld [vmem:[%s3404_s3 + $0x34] ss:$8 sps:$4 sm:$0xff]   ;;  %v2814_v47 = vld [vmem:[#allocation2 + $0x328] ss:$16 sps:$4 sm:$0xff]  }
  0x78   :  { %1440 = vmatpush1.bf16.msra.mxu1 %v2745_v49  ;;  %v2819_v49 = vld [vmem:[#allocation2 + $0x34c] ss:$16 sps:$4 sm:$0xff]  }
  0x79   :  { %1358 = vmatpush1.bf16.msra.mxu0 %v2742_v48  ;;  %1441 = vmatprep.subr.bf16.mxu1 %v2753_v51  ;;  %v2895_v48 = vld [vmem:[%s3404_s3 + $0x30] ss:$8 sps:$4 sm:$0xff]  }
  0x7a   :  { %1359 = vmatprep.subr.bf16.mxu0 %v2750_v50  ;;  %v2900_v50 = vld [vmem:[%s3404_s3 + $0x44] ss:$8 sps:$4 sm:$0xff]   ;;  %v2817_v51 = vld [vmem:[#allocation2 + $0x348] ss:$16 sps:$4 sm:$0xff]  }
  0x7c   :  { %1442 = vmatpush1.bf16.msra.mxu1 %v2751_v54  ;;  %v2822_v54 = vld [vmem:[#allocation2 + $0x36c] ss:$16 sps:$4 sm:$0xff]  }
  0x7d   :  { %1360 = vmatpush1.bf16.msra.mxu0 %v2748_v53  ;;  %1443 = vmatprep.subr.bf16.mxu1 %v2759_v56  ;;  %v2898_v53 = vld [vmem:[%s3404_s3 + $0x40] ss:$8 sps:$4 sm:$0xff]  }
  0x7e   :  { %1361 = vmatprep.subr.bf16.mxu0 %v2756_v55  ;;  %v2903_v55 = vld [vmem:[%s3404_s3 + $0x54] ss:$8 sps:$4 sm:$0xff]   ;;  %v2820_v56 = vld [vmem:[#allocation2 + $0x368] ss:$16 sps:$4 sm:$0xff]  }
  0x80   :  { %1444 = vmatpush1.bf16.msra.mxu1 %v2757_v58  ;;  %v2825_v58 = vld [vmem:[#allocation2 + $0x38c] ss:$16 sps:$4 sm:$0xff]  }
  0x81   :  { %1362 = vmatpush1.bf16.msra.mxu0 %v2754_v57  ;;  %1445 = vmatprep.subr.bf16.mxu1 %v2765_v60  ;;  %v2901_v57 = vld [vmem:[%s3404_s3 + $0x50] ss:$8 sps:$4 sm:$0xff]  }
  0x82   :  { %1363 = vmatprep.subr.bf16.mxu0 %v2762_v59  ;;  %v2906_v59 = vld [vmem:[%s3404_s3 + $0x64] ss:$8 sps:$4 sm:$0xff]   ;;  %v2823_v60 = vld [vmem:[#allocation2 + $0x388] ss:$16 sps:$4 sm:$0xff]  }
  0x84   :  { %1446 = vmatpush1.bf16.msra.mxu1 %v2763_v62  ;;  %v2828_v62 = vld [vmem:[#allocation2 + $0x3ac] ss:$16 sps:$4 sm:$0xff]  }
  0x85   :  { %1364 = vmatpush1.bf16.msra.mxu0 %v2760_v61  ;;  %1447 = vmatprep.subr.bf16.mxu1 %v2771_v0  ;;  %v2904_v61 = vld [vmem:[%s3404_s3 + $0x60] ss:$8 sps:$4 sm:$0xff]  }
  0x86   :  { %1365 = vmatprep.subr.bf16.mxu0 %v2768_v63  ;;  %v2909_v63 = vld [vmem:[%s3404_s3 + $0x74] ss:$8 sps:$4 sm:$0xff]   ;;  %v2826_v0 = vld [vmem:[#allocation2 + $0x3a8] ss:$16 sps:$4 sm:$0xff]  }
  0x88   :  { %1448 = vmatpush1.bf16.msra.mxu1 %v2769_v2  ;;  %v2831_v2 = vld [vmem:[#allocation2 + $0x3cc] ss:$16 sps:$4 sm:$0xff]  }
  0x89   :  { %1366 = vmatpush1.bf16.msra.mxu0 %v2766_v1  ;;  %1449 = vmatprep.subr.bf16.mxu1 %v2777_v4  ;;  %v2907_v1 = vld [vmem:[%s3404_s3 + $0x70] ss:$8 sps:$4 sm:$0xff]  }
  0x8a   :  { %1367 = vmatprep.subr.bf16.mxu0 %v2774_v3  ;;  %v2912_v3 = vld [vmem:[%s3404_s3 + $0x84] ss:$8 sps:$4 sm:$0xff]   ;;  %v2829_v4 = vld [vmem:[#allocation2 + $0x3c8] ss:$16 sps:$4 sm:$0xff]  }
  0x8c   :  { %1450 = vmatpush1.bf16.msra.mxu1 %v2775_v6  ;;  %v2834_v6 = vld [vmem:[#allocation2 + $0x3ec] ss:$16 sps:$4 sm:$0xff]  }
  0x8d   :  { %1368 = vmatpush1.bf16.msra.mxu0 %v2772_v5  ;;  %1451 = vmatprep.subr.bf16.mxu1 %v2783_v9  ;;  %v2910_v5 = vld [vmem:[%s3404_s3 + $0x80] ss:$8 sps:$4 sm:$0xff]  }
  0x8e   :  { %1369 = vmatprep.subr.bf16.mxu0 %v2780_v7  ;;  %v2915_v7 = vld [vmem:[%s3404_s3 + $0x94] ss:$8 sps:$4 sm:$0xff]   ;;  %v2832_v9 = vld [vmem:[#allocation2 + $0x3e8] ss:$16 sps:$4 sm:$0xff]  }
  0x90   :  { %1452 = vmatpush1.bf16.msra.mxu1 %v2781_v12  ;;  %v2837_v12 = vld [vmem:[#allocation2 + $0x40c] ss:$16 sps:$4 sm:$0xff]  }
  0x91   :  { %1370 = vmatpush1.bf16.msra.mxu0 %v2778_v10  ;;  %1462 = vmatprep.subr.bf16.mxu1 %v2786_v14  ;;  %v2913_v10 = vld [vmem:[%s3404_s3 + $0x90] ss:$8 sps:$4 sm:$0xff]  }
  0x92   :  { %1380 = vmatprep.subr.bf16.mxu0 %v2792_v15  ;;  %v2835_v14 = vld [vmem:[#allocation2 + $0x408] ss:$16 sps:$4 sm:$0xff]   ;;  %v2840_v15 = vld [vmem:[#allocation2 + $0x42c] ss:$16 sps:$4 sm:$0xff]  }
  0x93   :  { %1454 = vmatmul.mubr.bf16.vlgmr.msra.gmra.mrb[4].mxu1 %v3096_v8  ;;  %v2796_v8 = vld [vmem:[#allocation2 + $0x268] ss:$16 sps:$4 sm:$0xff]  }
  0x94   :  { %1372 = vmatmul.mubr.bf16.vlgmr.msra.gmra.mrb[0].mxu0 %v3112_v16  ;;  %1463 = vmatpush1.bf16.msra.mxu1 %v2784_v17  ;;  %v2916_v17 = vld [vmem:[%s3404_s3 + $0xa0] ss:$8 sps:$4 sm:$0xff]  }
  0x95   :  { %1381 = vmatpush1.bf16.msra.mxu0 %v2790_v18  ;;  %1464 = vmatprep.subr.bf16.mxu1 %v2789_v19  ;;  %v2921_v18 = vld [vmem:[%s3404_s3 + $0xb4] ss:$8 sps:$4 sm:$0xff]   ;;  %v2838_v19 = vld [vmem:[#allocation2 + $0x428] ss:$16 sps:$4 sm:$0xff]  }
  0x96   :  { %1412 = vmatprep.mubr.bf16.mxu0 %v3025_v23  ;;  %1494 = vmatprep.mubr.bf16.mxu1 %v3086_v52  ;;  %v2807_v52 = vld [vmem:[#allocation2 + $0x2cc] ss:$16 sps:$4 sm:$0xff]  }
  0x97   :  { %1544 = vmatprep.subr.bf16.mxu0 %v2882_v20  ;;  %v2843_v20 = vld [vmem:[#allocation2 + $0x44c] ss:$16 sps:$4 sm:$0xff]  }
  0x98   :  { %1465 = vmatpush1.bf16.msra.mxu1 %v2787_v21  ;;  %v2919_v21 = vld [vmem:[%s3404_s3 + $0xb0] ss:$8 sps:$4 sm:$0xff]  }
  0x99   :  { %1466 = vmatprep.subr.bf16.mxu1 %v2795_v22  ;;  %v2924_v22 = vld [vmem:[%s3404_s3 + $0xc4] ss:$8 sps:$4 sm:$0xff]  }
  0x9c   :  { %1467 = vmatpush1.bf16.msra.mxu1 %v2793_v24  ;;  %v2927_v24 = vld [vmem:[%s3404_s3 + $0xd4] ss:$8 sps:$4 sm:$0xff]  }
  0x9d   :  { %1468 = vmatprep.subr.bf16.mxu1 %v2798_v26  ;;  %v2849_v26 = vld [vmem:[#allocation2 + $0x48c] ss:$16 sps:$4 sm:$0xff]  }
  0xa0   :  { %2453 = vmatmul.mubr.msk.bf16.vlgmr.msra.gmra.mrb[0].mxu0 %vm1253_vm0, %v54_v28  ;;  %1469 = vmatpush1.bf16.msra.mxu1 %v2796_v8  ;;  %v2925_v8 = vld [vmem:[%s3404_s3 + $0xd0] ss:$8 sps:$4 sm:$0xff]  }
  0xa1   :  { %1545 = vmatpush1.bf16.msra.mxu0 %v2880_v27  ;;  %1470 = vmatprep.subr.bf16.mxu1 %v2801_v29  ;;  %v2847_v27 = vld [vmem:[#allocation2 + $0x488] ss:$16 sps:$4 sm:$0xff]  }
  0xa2   :  { %1576 = vmatprep.mubr.bf16.mxu0 %v3025_v23  ;;  %1989 = vmatprep.subr.bf16.mxu0 %v2888_v37  ;;  %v2841_v23 = vld [vmem:[#allocation2 + $0x448] ss:$16 sps:$4 sm:$0xff]   ;;  %v2930_v37 = vld [vmem:[%s3404_s3 + $0xe4] ss:$8 sps:$4 sm:$0xff]  }
  0xa3   :  { %v2850_v29 = vld [vmem:[#allocation2 + $0x4a8] ss:$16 sps:$4 sm:$0xff]  }
  0xa4   :  { %1471 = vmatpush1.bf16.msra.mxu1 %v2799_v30  ;;  %v2855_v30 = vld [vmem:[#allocation2 + $0x4cc] ss:$16 sps:$4 sm:$0xff]  }
  0xa5   :  { %1472 = vmatprep.subr.bf16.mxu1 %v2804_v31  ;;  %v2853_v31 = vld [vmem:[#allocation2 + $0x4c8] ss:$16 sps:$4 sm:$0xff]  }
  0xa8   :  { %2454 = vmatmul.mubr.msk.bf16.vlgmr.msra.gmra.mrb[4].mxu0 %vm1253_vm0, %v54_v28  ;;  %1473 = vmatpush1.bf16.msra.mxu1 %v2802_v32  ;;  %v2852_v28 = vld [vmem:[#allocation2 + $0x4ac] ss:$16 sps:$4 sm:$0xff]  }
  0xa9   :  { %1474 = vmatprep.subr.bf16.mxu1 %v2807_v52  ;;  %1990 = vmatpush1.bf16.msra.mxu0 %v2886_v36  ;;  %v2858_v32 = vld [vmem:[#allocation2 + $0x4ec] ss:$16 sps:$4 sm:$0xff]   ;;  %v2856_v52 = vld [vmem:[#allocation2 + $0x4e8] ss:$16 sps:$4 sm:$0xff]  }
  0xaa   :  { %1991 = vmatprep.subr.bf16.mxu0 %v2891_v38  ;;  %v2864_v36 = vld [vmem:[#allocation2 + $0x52c] ss:$16 sps:$4 sm:$0xff]   ;;  %v2928_v38 = vld [vmem:[%s3404_s3 + $0xe0] ss:$8 sps:$4 sm:$0xff]  }
  0xac   :  { %1475 = vmatpush1.bf16.msra.mxu1 %v2805_v33  ;;  %v2861_v33 = vld [vmem:[#allocation2 + $0x50c] ss:$16 sps:$4 sm:$0xff]  }
  0xad   :  { %1476 = vmatprep.subr.bf16.mxu1 %v2810_v34  ;;  %1992 = vmatpush1.bf16.msra.mxu0 %v2889_v40  ;;  %v2859_v34 = vld [vmem:[#allocation2 + $0x508] ss:$16 sps:$4 sm:$0xff]   ;;  %v2867_v40 = vld [vmem:[#allocation2 + $0x54c] ss:$16 sps:$4 sm:$0xff]  }
  0xae   :  { %1993 = vmatprep.subr.bf16.mxu0 %v2894_v42  ;;  %v2931_v42 = vld [vmem:[%s3404_s3 + $0xf0] ss:$8 sps:$4 sm:$0xff]  }
  0xb0   :  { %1477 = vmatpush1.bf16.msra.mxu1 %v2808_v39  ;;  %v2862_v39 = vld [vmem:[#allocation2 + $0x528] ss:$16 sps:$4 sm:$0xff]  }
  0xb1   :  { %1478 = vmatprep.subr.bf16.mxu1 %v2813_v41  ;;  %1994 = vmatpush1.bf16.msra.mxu0 %v2892_v44  ;;  %v2933_v41 = vld [vmem:[%s3404_s3 + $0xf4] ss:$8 sps:$4 sm:$0xff]  }
  0xb2   :  { %1995 = vmatprep.subr.bf16.mxu0 %v2897_v46  ;;  %v2870_v44 = vld [vmem:[#allocation2 + $0x56c] ss:$16 sps:$4 sm:$0xff]   ;;  %v2868_v46 = vld [vmem:[#allocation2 + $0x568] ss:$16 sps:$4 sm:$0xff]  }
  0xb4   :  { %1479 = vmatpush1.bf16.msra.mxu1 %v2811_v43  ;;  %v2865_v43 = vld [vmem:[#allocation2 + $0x548] ss:$16 sps:$4 sm:$0xff]  }
  0xb5   :  { %1480 = vmatprep.subr.bf16.mxu1 %v2816_v45  ;;  %1996 = vmatpush1.bf16.msra.mxu0 %v2895_v48  ;;  %v2936_v45 = vld [vmem:[%s3404_s3 + $0x104] ss:$8 sps:$4 sm:$0xff]   ;;  %v2871_v48 = vld [vmem:[#allocation2 + $0x588] ss:$16 sps:$4 sm:$0xff]  }
  0xb6   :  { %1997 = vmatprep.subr.bf16.mxu0 %v2900_v50  ;;  %v2874_v50 = vld [vmem:[#allocation2 + $0x5a8] ss:$16 sps:$4 sm:$0xff]  }
  0xb8   :  { %1481 = vmatpush1.bf16.msra.mxu1 %v2814_v47  ;;  %v2873_v47 = vld [vmem:[#allocation2 + $0x58c] ss:$16 sps:$4 sm:$0xff]  }
  0xb9   :  { %1482 = vmatprep.subr.bf16.mxu1 %v2819_v49  ;;  %1998 = vmatpush1.bf16.msra.mxu0 %v2898_v53  ;;  %v2876_v49 = vld [vmem:[#allocation2 + $0x5ac] ss:$16 sps:$4 sm:$0xff]   ;;  %v2877_v53 = vld [vmem:[#allocation2 + $0x5c8] ss:$16 sps:$4 sm:$0xff]  }
  0xba   :  { %1999 = vmatprep.subr.bf16.mxu0 %v2903_v55  ;;  %v2883_v55 = vld [vmem:[#allocation2 + $0x5e8] ss:$16 sps:$4 sm:$0xff]  }
  0xbc   :  { %1483 = vmatpush1.bf16.msra.mxu1 %v2817_v51  ;;  %v2879_v51 = vld [vmem:[#allocation2 + $0x5cc] ss:$16 sps:$4 sm:$0xff]  }
  0xbd   :  { %1484 = vmatprep.subr.bf16.mxu1 %v2822_v54  ;;  %2000 = vmatpush1.bf16.msra.mxu0 %v2901_v57  ;;  %v2885_v54 = vld [vmem:[#allocation2 + $0x5ec] ss:$16 sps:$4 sm:$0xff]  }
  0xbe   :  { %2001 = vmatprep.subr.bf16.mxu0 %v2906_v59 }
  0xc0   :  { %1485 = vmatpush1.bf16.msra.mxu1 %v2820_v56 }
  0xc1   :  { %1486 = vmatprep.subr.bf16.mxu1 %v2825_v58  ;;  %2002 = vmatpush1.bf16.msra.mxu0 %v2904_v61 }
  0xc2   :  { %2003 = vmatprep.subr.bf16.mxu0 %v2909_v63  ;;  %v3228_v63 = vld [vmem:[%s3403_s2] sm:$0xf] }
  0xc4   :  { %1487 = vmatpush1.bf16.msra.mxu1 %v2823_v60  ;;  %v253_v60 = vlaneseq }
  0xc5   :  { %1488 = vmatprep.subr.bf16.mxu1 %v2828_v62  ;;  %2004 = vmatpush1.bf16.msra.mxu0 %v2907_v1 }
  0xc6   :  { %2005 = vmatprep.subr.bf16.mxu0 %v2912_v3  ;;  %v3222_v61 = vshrl.u32 %v253_v60, 7  ;;  %v2982_v3 = vld [vmem:[%s3406_s5 + $0x40] sm:$0xff]   ;;  %v2981_v60 = vld [vmem:[%s3404_s3 + $0x1f4] ss:$8 sps:$4 sm:$0xff]  }
  0xc8   :  { %1489 = vmatpush1.bf16.msra.mxu1 %v2826_v0  ;;  %v255_v62 = vsub.s32 0, %v3222_v61  ;;  %v259_v0 = vsub.s32 1, %v3222_v61 }
  0xc9   :  { %1490 = vmatprep.subr.bf16.mxu1 %v2831_v2  ;;  %2006 = vmatpush1.bf16.msra.mxu0 %v2910_v5  ;;  %v2984_v5 = vld [vmem:[%s3406_s5 + $0x48] sm:$0xff]  }
  0xca   :  { %2007 = vmatprep.subr.bf16.mxu0 %v2915_v7  ;;  %v260_v1 = vrot.slane %v3228_v63, %v259_v0 }
  0xcc   :  { %1491 = vmatpush1.bf16.msra.mxu1 %v2829_v4  ;;  %v2983_v4 = vld [vmem:[%s3406_s5] sm:$0xff]  }
  0xcd   :  { %1492 = vmatprep.subr.bf16.mxu1 %v2834_v6  ;;  %2008 = vmatpush1.bf16.msra.mxu0 %v2913_v10 }
  0xce   :  { %2009 = vmatprep.subr.bf16.mxu0 %v2918_v13 }
  0xd0   :  { %1493 = vmatpush1.bf16.msra.mxu1 %v2832_v9 }
  0xd1   :  { %1503 = vmatprep.subr.bf16.mxu1 %v2837_v12  ;;  %2010 = vmatpush1.bf16.msra.mxu0 %v2916_v17 }
  0xd2   :  { %2011 = vmatprep.subr.bf16.mxu0 %v2921_v18  ;;  %v2986_v18 = vld [vmem:[%s3406_s5 + $0x50] sm:$0xff]  }
  0xd3   :  { %1495 = vmatmul.mubr.bf16.vlgmr.msra.gmra.mrb[4].mxu1 %v3098_v11  ;;  %v2846_v11 = vld [vmem:[#allocation2 + $0x46c] ss:$16 sps:$4 sm:$0xff]  }
  0xd4   :  { %1504 = vmatpush1.bf16.msra.mxu1 %v2835_v14  ;;  %1535 = vmatprep.mubr.bf16.mxu1 %v3106_v35  ;;  %v2922_v35 = vld [vmem:[%s3404_s3 + $0xc0] ss:$8 sps:$4 sm:$0xff]  }
  0xd5   :  { %1505 = vmatprep.subr.bf16.mxu1 %v2840_v15  ;;  %2012 = vmatpush1.bf16.msra.mxu0 %v2919_v21  ;;  %v2985_v14 = vld [vmem:[%s3406_s5 + $0x8] sm:$0xff]  }
  0xd6   :  { %2013 = vmatprep.subr.bf16.mxu0 %v2924_v22  ;;  %v2934_v21 = vld [vmem:[%s3404_s3 + $0x100] ss:$8 sps:$4 sm:$0xff]   ;;  %v2987_v22 = vld [vmem:[%s3406_s5 + $0x10] sm:$0xff]  }
  0xd8   :  { %1506 = vmatpush1.bf16.msra.mxu1 %v2838_v19 }
  0xd9   :  { %1507 = vmatprep.subr.bf16.mxu1 %v2843_v20  ;;  %2014 = vmatpush1.bf16.msra.mxu0 %v2922_v35  ;;  %v2988_v35 = vld [vmem:[%s3406_s5 + $0x58] sm:$0xff]  }
  0xda   :  { %2015 = vmatprep.subr.bf16.mxu0 %v2927_v24 }
  0xdc   :  { %1508 = vmatpush1.bf16.msra.mxu1 %v2841_v23 }
  0xdd   :  { %1509 = vmatprep.subr.bf16.mxu1 %v2846_v11  ;;  %2016 = vmatpush1.bf16.msra.mxu0 %v2925_v8  ;;  %v2939_v11 = vld [vmem:[%s3404_s3 + $0x114] ss:$8 sps:$4 sm:$0xff]  }
  0xde   :  { %2017 = vmatprep.subr.bf16.mxu0 %v2930_v37  ;;  %v2948_v37 = vld [vmem:[%s3404_s3 + $0x144] ss:$8 sps:$4 sm:$0xff]  }
  0xe0   :  { %1510 = vmatpush1.bf16.msra.mxu1 %v2844_v25 }
  0xe1   :  { %1511 = vmatprep.subr.bf16.mxu1 %v2849_v26  ;;  %2018 = vmatpush1.bf16.msra.mxu0 %v2928_v38  ;;  %v2937_v26 = vld [vmem:[%s3404_s3 + $0x110] ss:$8 sps:$4 sm:$0xff]   ;;  %v2946_v38 = vld [vmem:[%s3404_s3 + $0x140] ss:$8 sps:$4 sm:$0xff]  }
  0xe2   :  { %2019 = vmatprep.subr.bf16.mxu0 %v2933_v41  ;;  %v2954_v41 = vld [vmem:[%s3404_s3 + $0x164] ss:$8 sps:$4 sm:$0xff]  }
  0xe4   :  { %1512 = vmatpush1.bf16.msra.mxu1 %v2847_v27  ;;  %v2989_v27 = vld [vmem:[%s3406_s5 + $0x18] sm:$0xff]  }
  0xe5   :  { %1513 = vmatprep.subr.bf16.mxu1 %v2852_v28  ;;  %2020 = vmatpush1.bf16.msra.mxu0 %v2931_v42  ;;  %v2942_v28 = vld [vmem:[%s3404_s3 + $0x124] ss:$8 sps:$4 sm:$0xff]   ;;  %v2952_v42 = vld [vmem:[%s3404_s3 + $0x160] ss:$8 sps:$4 sm:$0xff]  }
  0xe6   :  { %2030 = vmatprep.subr.bf16.mxu0 %v2936_v45  ;;  %v2960_v45 = vld [vmem:[%s3404_s3 + $0x184] ss:$8 sps:$4 sm:$0xff]  }
  0xe8   :  { %1514 = vmatpush1.bf16.msra.mxu1 %v2850_v29 }
  0xe9   :  { %1515 = vmatprep.subr.bf16.mxu1 %v2855_v30  ;;  %v2990_v30 = vld [vmem:[%s3406_s5 + $0x60] sm:$0xff]  }
  0xec   :  { %1516 = vmatpush1.bf16.msra.mxu1 %v2853_v31  ;;  %v2940_v31 = vld [vmem:[%s3404_s3 + $0x120] ss:$8 sps:$4 sm:$0xff]  }
  0xed   :  { %1517 = vmatprep.subr.bf16.mxu1 %v2858_v32  ;;  %v2991_v32 = vld [vmem:[%s3406_s5 + $0x20] sm:$0xff]  }
  0xf0   :  { %1518 = vmatpush1.bf16.msra.mxu1 %v2856_v52  ;;  %v2945_v52 = vld [vmem:[%s3404_s3 + $0x134] ss:$8 sps:$4 sm:$0xff]  }
  0xf1   :  { %1519 = vmatprep.subr.bf16.mxu1 %v2861_v33  ;;  %v2992_v33 = vld [vmem:[%s3406_s5 + $0x68] sm:$0xff]  }
  0xf4   :  { %1520 = vmatpush1.bf16.msra.mxu1 %v2859_v34  ;;  %v2943_v34 = vld [vmem:[%s3404_s3 + $0x130] ss:$8 sps:$4 sm:$0xff]  }
  0xf5   :  { %1521 = vmatprep.subr.bf16.mxu1 %v2864_v36  ;;  %v2993_v36 = vld [vmem:[%s3406_s5 + $0x28] sm:$0xff]  }
  0xf8   :  { %1522 = vmatpush1.bf16.msra.mxu1 %v2862_v39  ;;  %v2951_v39 = vld [vmem:[%s3404_s3 + $0x154] ss:$8 sps:$4 sm:$0xff]  }
  0xf9   :  { %1523 = vmatprep.subr.bf16.mxu1 %v2867_v40  ;;  %v2949_v40 = vld [vmem:[%s3404_s3 + $0x150] ss:$8 sps:$4 sm:$0xff]  }
  0xfc   :  { %1524 = vmatpush1.bf16.msra.mxu1 %v2865_v43  ;;  %v2957_v43 = vld [vmem:[%s3404_s3 + $0x174] ss:$8 sps:$4 sm:$0xff]  }
  0xfd   :  { %1525 = vmatprep.subr.bf16.mxu1 %v2870_v44  ;;  %v2955_v44 = vld [vmem:[%s3404_s3 + $0x170] ss:$8 sps:$4 sm:$0xff]  }
 0x100   :  { %1526 = vmatpush1.bf16.msra.mxu1 %v2868_v46  ;;  %v2958_v46 = vld [vmem:[%s3404_s3 + $0x180] ss:$8 sps:$4 sm:$0xff]  }
 0x101   :  { %1527 = vmatprep.subr.bf16.mxu1 %v2873_v47  ;;  %v2963_v47 = vld [vmem:[%s3404_s3 + $0x194] ss:$8 sps:$4 sm:$0xff]  }
 0x104   :  { %1528 = vmatpush1.bf16.msra.mxu1 %v2871_v48  ;;  %v2961_v48 = vld [vmem:[%s3404_s3 + $0x190] ss:$8 sps:$4 sm:$0xff]  }
 0x105   :  { %1529 = vmatprep.subr.bf16.mxu1 %v2876_v49  ;;  %v2966_v49 = vld [vmem:[%s3404_s3 + $0x1a4] ss:$8 sps:$4 sm:$0xff]  }
 0x108   :  { %1530 = vmatpush1.bf16.msra.mxu1 %v2874_v50  ;;  %v2964_v50 = vld [vmem:[%s3404_s3 + $0x1a0] ss:$8 sps:$4 sm:$0xff]  }
 0x109   :  { %1531 = vmatprep.subr.bf16.mxu1 %v2879_v51  ;;  %v2969_v51 = vld [vmem:[%s3404_s3 + $0x1b4] ss:$8 sps:$4 sm:$0xff]  }
 0x10c   :  { %1532 = vmatpush1.bf16.msra.mxu1 %v2877_v53  ;;  %v2967_v53 = vld [vmem:[%s3404_s3 + $0x1b0] ss:$8 sps:$4 sm:$0xff]  }
 0x10d   :  { %1533 = vmatprep.subr.bf16.mxu1 %v2885_v54  ;;  %v2972_v54 = vld [vmem:[%s3404_s3 + $0x1c4] ss:$8 sps:$4 sm:$0xff]  }
 0x110   :  { %1534 = vmatpush1.bf16.msra.mxu1 %v2883_v55  ;;  %v2970_v55 = vld [vmem:[%s3404_s3 + $0x1c0] ss:$8 sps:$4 sm:$0xff]  }
 0x111   :  { %2536 = vmatprep.subr.bf16.mxu1 %v2982_v3 }
 0x113   :  { %1536 = vmatmul.mubr.bf16.vlgmr.msra.gmra.mrb[4].mxu1 %v3112_v16  ;;  %v256_v16 = vrot.slane %v3228_v63, %v255_v62 }
 0x114   :  { %2537 = vmatpush3.bf16.msra.mxu1 %v2983_v4 }
 0x115   :  { %2538 = vmatprep.subr.bf16.mxu1 %v2984_v5 }
 0x118   :  { %2539 = vmatpush3.bf16.msra.mxu1 %v2985_v14 }
 0x119   :  { %2540 = vmatprep.subr.bf16.mxu1 %v2986_v18 }
 0x11c   :  { %2541 = vmatpush3.bf16.msra.mxu1 %v2987_v22  ;;  %v2997_v22 = vld [vmem:[%s3406_s5 + $0x38] sm:$0xff]  }
 0x11d   :  { %2542 = vmatprep.subr.bf16.mxu1 %v2988_v35 }
 0x120   :  { %2543 = vmatpush3.bf16.msra.mxu1 %v2989_v27 }
 0x121   :  { %2544 = vmatprep.subr.bf16.mxu1 %v2990_v30 }
 0x124   :  { %2545 = vmatpush3.bf16.msra.mxu1 %v2991_v32 }
 0x125   :  { %2546 = vmatprep.subr.bf16.mxu1 %v2992_v33 }
 0x126   :  { %v1291_v56 = vpop.f32.mrb[0].mxu1 }
 0x127   :  { %v1293_v57 = vpop.f32.mrb[1].mxu1  ;;  %v1292_v2 = vadd.f32 %v1291_v56, %v256_v16  ;;  %v2975_v56 = vld [vmem:[%s3404_s3 + $0x1d4] ss:$8 sps:$4 sm:$0xff]   ;;  %v2979_v16 = vld [vmem:[%s3404_s3 + $0x1f0] ss:$8 sps:$4 sm:$0xff]  }
 0x128   :  { %v1295_v58 = vpop.f32.mrb[2].mxu1  ;;  %v1294_v6 = vadd.f32 %v1293_v57, %v260_v1  ;;  %2547 = vmatpush3.bf16.msra.mxu1 %v2993_v36  ;;  %v2973_v57 = vld [vmem:[%s3404_s3 + $0x1d0] ss:$8 sps:$4 sm:$0xff]   ;;  %v263_v1 = vsub.s32 2, %v3222_v61 }
 0x129   :  { %v1296_v59 = vpop.f32.mrb[3].mxu1  ;;  %v2978_v58 = vld [vmem:[%s3404_s3 + $0x1e4] ss:$8 sps:$4 sm:$0xff]  }
 0x12a   :  { %v2976_v59 = vld [vmem:[%s3404_s3 + $0x1e0] ss:$8 sps:$4 sm:$0xff]   ;;  %v264_v3 = vrot.slane %v3228_v63, %v263_v1 }
 0x173   :  { %v1414_v7 = vpop.f32.mrb[0].mxu0 }
 0x174   :  { %v2559_v9 = vadd.f32 %v1414_v7, %v1292_v2  ;;  %v1416_v10 = vpop.f32.mrb[1].mxu0  ;;  %v267_v2 = vsub.s32 3, %v3222_v61 }
 0x175   :  { %v2561_v12 = vadd.f32 %v1416_v10, %v1294_v6  ;;  %v1418_v13 = vpop.f32.mrb[2].mxu0 }
 0x176   :  { %v1585_v15 = vmax.f32 %v2559_v9, 0.0  ;;  %v1419_v17 = vpop.f32.mrb[3].mxu0  ;;  %v268_v4 = vrot.slane %v3228_v63, %v267_v2  ;;  %v2994_v63 = vld [vmem:[%s3406_s5 + $0x70] sm:$0xff]  }
 0x177   :  { %v1586_v19 = vmax.f32 %v2561_v12, 0.0  ;;  %2548 = vmatprep.subr.bf16.mxu1 %v2994_v63 }
 0x178   :  { %v1589_v23 = vpack.c.bf16 %v1585_v15, %v1585_v15 }
 0x179   :  { %v1590_v20 = vpack.c.bf16 %v1586_v19, %v1586_v19 }
 0x17b   :  { %2021 = vmatprep.mubr.bf16.mxu0 %v1590_v20  ;;  %v3264_v24 = vpop.f32.mrb[4].mxu0  ;;  %v2995_v20 = vld [vmem:[%s3406_s5 + $0x30] sm:$0xff]  }
 0x17c   :  { %2022 = vmatmul.mubr.bf16.vlgmr.msra.gmra.mrb[8].mxu0 %v1589_v23  ;;  %v3266_v25 = vpop.f32.mrb[5].mxu0  ;;  %2549 = vmatpush3.bf16.msra.mxu1 %v2995_v20  ;;  %v1657_v23 = vld [vmem:[%s3405_s4] sm:$0x3] }
 0x17d   :  { %2031 = vmatpush1.bf16.msra.mxu0 %v2934_v21  ;;  %v1582_v8 = vpop.f32.mrb[6].mxu0  ;;  %v2996_v21 = vld [vmem:[%s3406_s5 + $0x78] sm:$0xff]   ;;  %v1666_v35 = vrot.slane %v1657_v23, %v259_v0 }
 0x17e   :  { %2032 = vmatprep.subr.bf16.mxu0 %v2939_v11  ;;  %v1583_v29 = vpop.f32.mrb[7].mxu0  ;;  %2550 = vmatprep.subr.bf16.mxu1 %v2996_v21  ;;  %v1662_v11 = vrot.slane %v1657_v23, %v255_v62  ;;  %v2519_v62 = vld [vmem:[%s3407_s6] ss:$0 sm:$0xff] }
 0x180   :  { %2551 = vmatpush3.bf16.msra.mxu1 %v2997_v22 }
 0x181   :  { %2033 = vmatpush1.bf16.msra.mxu0 %v2937_v26 }
 0x182   :  { %2034 = vmatprep.subr.bf16.mxu0 %v2942_v28 }
 0x185   :  { %2035 = vmatpush1.bf16.msra.mxu0 %v2940_v31 }
 0x186   :  { %2036 = vmatprep.subr.bf16.mxu0 %v2945_v52 }
 0x189   :  { %2037 = vmatpush1.bf16.msra.mxu0 %v2943_v34 }
 0x18a   :  { %2038 = vmatprep.subr.bf16.mxu0 %v2948_v37 }
 0x18d   :  { %2039 = vmatpush1.bf16.msra.mxu0 %v2946_v38 }
 0x18e   :  { %2040 = vmatprep.subr.bf16.mxu0 %v2951_v39 }
 0x191   :  { %2041 = vmatpush1.bf16.msra.mxu0 %v2949_v40 }
 0x192   :  { %2042 = vmatprep.subr.bf16.mxu0 %v2954_v41 }
 0x195   :  { %2043 = vmatpush1.bf16.msra.mxu0 %v2952_v42 }
 0x196   :  { %2044 = vmatprep.subr.bf16.mxu0 %v2957_v43 }
 0x199   :  { %2045 = vmatpush1.bf16.msra.mxu0 %v2955_v44 }
 0x19a   :  { %2046 = vmatprep.subr.bf16.mxu0 %v2960_v45 }
 0x19d   :  { %2047 = vmatpush1.bf16.msra.mxu0 %v2958_v46 }
 0x19e   :  { %2048 = vmatprep.subr.bf16.mxu0 %v2963_v47 }
 0x1a1   :  { %2049 = vmatpush1.bf16.msra.mxu0 %v2961_v48 }
 0x1a2   :  { %2050 = vmatprep.subr.bf16.mxu0 %v2966_v49 }
 0x1a5   :  { %2051 = vmatpush1.bf16.msra.mxu0 %v2964_v50 }
 0x1a6   :  { %2052 = vmatprep.subr.bf16.mxu0 %v2969_v51 }
 0x1a9   :  { %2053 = vmatpush1.bf16.msra.mxu0 %v2967_v53 }
 0x1aa   :  { %2054 = vmatprep.subr.bf16.mxu0 %v2972_v54 }
 0x1ad   :  { %2055 = vmatpush1.bf16.msra.mxu0 %v2970_v55 }
 0x1ae   :  { %2056 = vmatprep.subr.bf16.mxu0 %v2975_v56 }
 0x1b1   :  { %2057 = vmatpush1.bf16.msra.mxu0 %v2973_v57 }
 0x1b2   :  { %2058 = vmatprep.subr.bf16.mxu0 %v2978_v58 }
 0x1b5   :  { %2059 = vmatpush1.bf16.msra.mxu0 %v2976_v59 }
 0x1b6   :  { %2060 = vmatprep.subr.bf16.mxu0 %v2981_v60 }
 0x1b9   :  { %2061 = vmatpush1.bf16.msra.mxu0 %v2979_v16 }
 0x1e6   :  { %v1537_v5 = vpop.f32.mrb[4].mxu1 }
 0x1e7   :  { %v2562_v6 = vadd.f32 %v1537_v5, %v264_v3  ;;  %v1539_v7 = vpop.f32.mrb[5].mxu1 }
 0x1e8   :  { %v2564_v9 = vadd.f32 %v1539_v7, %v268_v4  ;;  %v1541_v10 = vpop.f32.mrb[6].mxu1 }
 0x1e9   :  { %v2563_v12 = vadd.f32 %v2562_v6, %v3264_v24  ;;  %v1542_v13 = vpop.f32.mrb[7].mxu1 }
 0x1ea   :  { %v2565_v14 = vadd.f32 %v2564_v9, %v3266_v25 }
 0x1eb   :  { %v1587_v15 = vmax.f32 %v2563_v12, 0.0 }
 0x1ec   :  { %v1588_v17 = vmax.f32 %v2565_v14, 0.0 }
 0x1ed   :  { %v1591_v19 = vpack.c.bf16 %v1587_v15, %v1587_v15 }
 0x1ee   :  { %v1592_v18 = vpack.c.bf16 %v1588_v17, %v1588_v17 }
 0x1f0   :  { %2062 = vmatprep.mubr.bf16.mxu0 %v1592_v18 }
 0x1f1   :  { %2063 = vmatmul.mubr.bf16.vlgmr.msra.gmra.mrb[8].mxu0 %v1591_v19 }
 0x2c4   :  { %v2064_v24 = vpop.f32.mrb[8].mxu0 }
 0x2c5   :  { %v2566_v25 = vadd.f32 %v2064_v24, %v1662_v11  ;;  %v2066_v26 = vpop.f32.mrb[9].mxu0 }
 0x2c6   :  { %v2567_v8 = vadd.f32 %v2066_v26, %v1666_v35  ;;  %v2068_v27 = vpop.f32.mrb[10].mxu0 }
 0x2c7   :  { %v2071_v28 = vmax.f32 %v2566_v25, 0.0  ;;  %v2069_v29 = vpop.f32.mrb[11].mxu0 }
 0x2c8   :  { %v2072_v30 = vmax.f32 %v2567_v8, 0.0 }
 0x2c9   :  { %v2073_v32 = vpack.c.bf16 %v2071_v28, %v2071_v28 }
 0x2ca   :  { %v2074_v31 = vpack.c.bf16 %v2072_v30, %v2072_v30 }
 0x2cc   :  { %2242 = vmatprep.mubr.bf16.mxu1 %v2074_v31 }
 0x2cd   :  { %2243 = vmatmul.mubr.bf16.vlgmr.msra.gmra.mrb[8].mxu1 %v2073_v32 }
 0x3a0   :  { %v2552_v52 = vpop.f32.mrb[8].mxu1 }
 0x3a1   :  { %v2553_v33 = vpop.f32.mrb[9].mxu1 }
 0x3a2   :  { %v2554_v61 = vadd.f32 %v2553_v33, %v2552_v52  ;;  %v2555_v0 = vpop.f32.mrb[10].mxu1 }
 0x3a3   :  { %v2556_v34 = vpop.f32.mrb[11].mxu1 }
 0x3a4   :  { %v2245_v36 = vadd.f32 %v2554_v61, %v2519_v62 }
 0x3a6   :  { %v2250_v37 = vpack.c.bf16 %v2245_v36, %v2245_v36 }
 0x3a8   :  { %2251 = vst [vmem:[%s3408_s7] sm:$0xf] %v2250_v37 }
 0x3a9   :  { %2256 = vsyncpa [#allocation3], 1 }

</bundles_post_ra>
